<compile_context>
chip_gen: v6e
topology: v6e:2x2x1
jax: 0.10.0
libtpu: 0.0.40
codegen_flags: <defaults>
</compile_context>

<pallas_src>
import functools

import jax
import jax.numpy as jnp
from jax.experimental import pallas as pl
from jax.experimental.pallas import tpu as pltpu


def _round_up(n: int, m: int) -> int:
    return ((n + m - 1) // m) * m


def _cdiv(a: int, b: int) -> int:
    return -(-a // b)


def _mlp_kernel(xp_ref, w1b_ref, b1b_ref, w2b_ref, b2b_ref, o_ref):
    # xp_ref : (TR, 128)   TR packed rows; each row = P samples x Dp features (lane-dense)
    # w1b_ref: (128, P*H)  block-diagonal fc1 weights  kron(I_P, W1^T)   (VMEM-resident)
    # b1b_ref: (1, P*H)    fc1 bias tiled per packed sample
    # w2b_ref: (P*H, P*O)  block-diagonal fc2 weights  kron(I_P, W2^T)
    # b2b_ref: (1, P*O)    fc2 bias tiled per packed sample
    # o_ref  : (TR, P*O)
    h = jnp.dot(xp_ref[...], w1b_ref[...], preferred_element_type=jnp.float32)  # MXU, K=128
    h = jnp.maximum(h + b1b_ref[...], 0.0)                                       # bias + ReLU (VPU)
    z = jnp.dot(h, w2b_ref[...], preferred_element_type=jnp.float32) + b2b_ref[...]  # MXU, K=P*H
    o_ref[...] = (1.0 / (1.0 + jnp.exp(-z))).astype(o_ref.dtype)                 # exact sigmoid (EUP)


@functools.partial(jax.jit, static_argnames=("tm_max",))
def neural_network_forward(x, w1, b1, w2, b2, *, tm_max=32768):
    """sigmoid(relu(x @ w1.T + b1) @ w2.T + b2) with torch nn.Linear weight layouts.

    x : (B, D) float32
    w1: (H, D) float32   (torch fc1.weight, H=8)
    b1: (H,)   float32
    w2: (O, H) float32   (torch fc2.weight, O=1)
    b2: (O,)   float32
    returns: (B, O) float32 in [0, 1]
    """
    B, D = x.shape
    H = w1.shape[0]
    O = w2.shape[0]

    # --- packing geometry: P samples per 128-lane row ---------------------------
    if D <= 128:
        Dp = 1
        while Dp < D:
            Dp *= 2                       # pad features to a power of two that divides 128
        P = 128 // Dp
    else:
        Dp = _round_up(D, 128)            # wide-feature fallback: one sample per row
        P = 1
    L = Dp * P                            # lane width of a packed row (128 when D <= 128)

    # --- batch padding + balanced tiles (>= 2 grid steps for pipelining/megacore) -
    align = max(128, 8 * P)               # sublane & lane alignment of the packed layout
    bp = _round_up(B, align)
    R = bp // P                           # packed rows
    TR_max = max(8, tm_max // P)          # max packed rows per tile
    n_tiles = _cdiv(R, TR_max)
    if R >= 16:
        n_tiles = max(n_tiles, 2)         # >=2 steps: DMA/compute overlap, both v7x TCs busy
    TR = _round_up(_cdiv(R, n_tiles), 8)  # balanced tile, sublane-aligned
    Rp = n_tiles * TR
    bp = Rp * P

    # --- pack x (free reshape when no padding is needed) -------------------------
    if bp == B and Dp == D:
        xp = x.astype(jnp.float32).reshape(Rp, L)
    else:
        xp = jnp.zeros((bp, Dp), jnp.float32).at[:B, :D].set(x.astype(jnp.float32))
        xp = xp.reshape(Rp, L)

    # --- fold the packing into block-diagonal weights (tiny, computed under jit) --
    w1f = jnp.zeros((H, Dp), jnp.float32).at[:, :D].set(w1.astype(jnp.float32))
    eye_p = jnp.eye(P, dtype=jnp.float32)
    w1b = jnp.kron(eye_p, w1f.T)                                    # (L, P*H)
    b1b = jnp.tile(b1.astype(jnp.float32), P).reshape(1, P * H)     # (1, P*H)
    w2b = jnp.kron(eye_p, w2.astype(jnp.float32).T)                 # (P*H, P*O)
    b2b = jnp.tile(b2.astype(jnp.float32), P).reshape(1, P * O)     # (1, P*O)

    out = pl.pallas_call(
        _mlp_kernel,
        out_shape=jax.ShapeDtypeStruct((Rp, P * O), jnp.float32),
        grid=(n_tiles,),
        in_specs=[
            pl.BlockSpec((TR, L), lambda i: (i, 0)),           # x tile: lane-dense, pipelined
            pl.BlockSpec((L, P * H), lambda i: (0, 0)),        # w1b: VMEM-resident
            pl.BlockSpec((1, P * H), lambda i: (0, 0)),        # b1b: resident
            pl.BlockSpec((P * H, P * O), lambda i: (0, 0)),    # w2b: resident
            pl.BlockSpec((1, P * O), lambda i: (0, 0)),        # b2b: resident
        ],
        out_specs=pl.BlockSpec((TR, P * O), lambda i: (i, 0)),
        compiler_params=pltpu.CompilerParams(
            dimension_semantics=("parallel",),                 # megacore sharding on v7x
            vmem_limit_bytes=32 * 1024 * 1024,                 # ample headroom on all chips
        ),
    )(xp, w1b, b1b, w2b, b2b)

    # un-pack: (Rp, P*O) -> (bp, O), drop batch padding.
    return out.reshape(bp, O)[:B]


def init_params(key, input_dim, hidden=8, out=1):
    """Deterministic PyTorch-style (uniform +/- 1/sqrt(fan_in)) init, torch layouts."""
    k1, k2, k3, k4 = jax.random.split(key, 4)
    bound1 = 1.0 / jnp.sqrt(jnp.float32(input_dim))
    bound2 = 1.0 / jnp.sqrt(jnp.float32(hidden))
    w1 = jax.random.uniform(k1, (hidden, input_dim), jnp.float32, -bound1, bound1)
    b1 = jax.random.uniform(k2, (hidden,), jnp.float32, -bound1, bound1)
    w2 = jax.random.uniform(k3, (out, hidden), jnp.float32, -bound2, bound2)
    b2 = jax.random.uniform(k4, (out,), jnp.float32, -bound2, bound2)
    return w1, b1, w2, b2


# TODO(synk): costSenstitiveLoss is a training-time scalar loss, not part of the
# forward pass, so it is intentionally not implemented as a kernel.

if __name__ == "__main__":
    key = jax.random.PRNGKey(0)
    kx, kp = jax.random.split(key)

    batch = 300       # not a multiple of 128 on purpose: exercises the padding path
    input_dim = 16

    x = jax.random.normal(kx, (batch, input_dim), jnp.float32)
    w1, b1, w2, b2 = init_params(kp, input_dim)

    out = jax.block_until_ready(neural_network_forward(x, w1, b1, w2, b2))

    # Reference check in plain JAX (torch semantics: y = x @ W^T + b).
    ref = jax.nn.sigmoid(jnp.maximum(x @ w1.T + b1, 0.0) @ w2.T + b2)
    assert out.shape == (batch, 1)
    # Tolerance covers MXU matmul precision; sigmoid is exact (no approx reciprocal).
    assert jnp.allclose(out, ref, atol=2e-3, rtol=2e-3), float(jnp.max(jnp.abs(out - ref)))

    print("KERNEL_OK")
</pallas_src>

<mosaic_0001>
module attributes {stable_mosaic.version = 11 : i64} {
  func.func @_mlp_kernel(%arg0: i32, %arg1: memref<24x128xf32, #tpu.memory_space<vmem>>, %arg2: memref<128x64xf32, #tpu.memory_space<vmem>>, %arg3: memref<1x64xf32, #tpu.memory_space<vmem>>, %arg4: memref<64x8xf32, #tpu.memory_space<vmem>>, %arg5: memref<1x8xf32, #tpu.memory_space<vmem>>, %arg6: memref<24x8xf32, #tpu.memory_space<vmem>>) attributes {dimension_semantics = [#tpu.dimension_semantics<parallel>], iteration_bounds = array<i64: 2>, scalar_prefetch = 0 : i64, scratch_operands = 0 : i64, tpu.core_type = #tpu.core_type<tc>, window_params = [{transform_indices = @transform_0, window_bounds = array<i64: 24, 128>}, {pipeline_mode = #tpu.pipeline_mode<synchronous>, transform_indices = @transform_1, window_bounds = array<i64: 128, 64>}, {pipeline_mode = #tpu.pipeline_mode<synchronous>, transform_indices = @transform_2, window_bounds = array<i64: 1, 64>}, {pipeline_mode = #tpu.pipeline_mode<synchronous>, transform_indices = @transform_3, window_bounds = array<i64: 64, 8>}, {pipeline_mode = #tpu.pipeline_mode<synchronous>, transform_indices = @transform_4, window_bounds = array<i64: 1, 8>}, {transform_indices = @transform_5, window_bounds = array<i64: 24, 8>}]} {
    %c0 = arith.constant 0 : index
    %c0_0 = arith.constant 0 : index
    %0 = vector.load %arg1[%c0, %c0_0] : memref<24x128xf32, #tpu.memory_space<vmem>>, vector<24x128xf32>
    %c0_1 = arith.constant 0 : index
    %c0_2 = arith.constant 0 : index
    %1 = vector.load %arg2[%c0_1, %c0_2] : memref<128x64xf32, #tpu.memory_space<vmem>>, vector<128x64xf32>
    %cst = arith.constant dense<0.000000e+00> : vector<24x64xf32>
    %2 = tpu.matmul %0, %1, %cst {dimension_numbers = #tpu.dot_dimension_numbers<[1], [0], [0], [1], [0, 0, 1, 1], [], []>} : vector<24x128xf32>, vector<128x64xf32>, vector<24x64xf32> -> vector<24x64xf32>
    %c0_3 = arith.constant 0 : index
    %c0_4 = arith.constant 0 : index
    %3 = vector.load %arg3[%c0_3, %c0_4] : memref<1x64xf32, #tpu.memory_space<vmem>>, vector<1x64xf32>
    %4 = vector.broadcast %3 : vector<1x64xf32> to vector<24x64xf32>
    %5 = arith.addf %2, %4 : vector<24x64xf32>
    %cst_5 = arith.constant 0.000000e+00 : f32
    %6 = vector.broadcast %cst_5 : f32 to vector<24x64xf32>
    %7 = arith.maximumf %5, %6 : vector<24x64xf32>
    %c0_6 = arith.constant 0 : index
    %c0_7 = arith.constant 0 : index
    %8 = vector.load %arg4[%c0_6, %c0_7] : memref<64x8xf32, #tpu.memory_space<vmem>>, vector<64x8xf32>
    %cst_8 = arith.constant dense<0.000000e+00> : vector<24x8xf32>
    %9 = tpu.matmul %7, %8, %cst_8 {dimension_numbers = #tpu.dot_dimension_numbers<[1], [0], [0], [1], [0, 0, 1, 1], [], []>} : vector<24x64xf32>, vector<64x8xf32>, vector<24x8xf32> -> vector<24x8xf32>
    %c0_9 = arith.constant 0 : index
    %c0_10 = arith.constant 0 : index
    %10 = vector.load %arg5[%c0_9, %c0_10] : memref<1x8xf32, #tpu.memory_space<vmem>>, vector<1x8xf32>
    %11 = vector.broadcast %10 : vector<1x8xf32> to vector<24x8xf32>
    %12 = arith.addf %9, %11 : vector<24x8xf32>
    %cst_11 = arith.constant 0.000000e+00 : f32
    %13 = vector.broadcast %cst_11 : f32 to vector<24x8xf32>
    %14 = arith.subf %13, %12 : vector<24x8xf32>
    %15 = math.exp %14 : vector<24x8xf32>
    %cst_12 = arith.constant 1.000000e+00 : f32
    %16 = vector.broadcast %cst_12 : f32 to vector<24x8xf32>
    %17 = arith.addf %16, %15 : vector<24x8xf32>
    %cst_13 = arith.constant 1.000000e+00 : f32
    %18 = vector.broadcast %cst_13 : f32 to vector<24x8xf32>
    %19 = arith.divf %18, %17 : vector<24x8xf32>
    %c0_14 = arith.constant 0 : index
    %c0_15 = arith.constant 0 : index
    %20 = vector.load %arg6[%c0_14, %c0_15] : memref<24x8xf32, #tpu.memory_space<vmem>>, vector<24x8xf32>
    tpu.vector_store %arg6[%c0_14, %c0_15], %19 {strides = array<i32>} : memref<24x8xf32, #tpu.memory_space<vmem>>, vector<24x8xf32>,
    return
  }
  func.func @transform_0(%arg0: i32) -> (i32, i32) {
    %c0_i32 = arith.constant 0 : i32
    %c0_i32_0 = arith.constant 0 : i32
    return %arg0, %c0_i32 : i32, i32
  }
  func.func @transform_1(%arg0: i32) -> (i32, i32) {
    %c0_i32 = arith.constant 0 : i32
    %c0_i32_0 = arith.constant 0 : i32
    %c0_i32_1 = arith.constant 0 : i32
    return %c0_i32, %c0_i32_0 : i32, i32
  }
  func.func @transform_2(%arg0: i32) -> (i32, i32) {
    %c0_i32 = arith.constant 0 : i32
    %c0_i32_0 = arith.constant 0 : i32
    %c0_i32_1 = arith.constant 0 : i32
    return %c0_i32, %c0_i32_0 : i32, i32
  }
  func.func @transform_3(%arg0: i32) -> (i32, i32) {
    %c0_i32 = arith.constant 0 : i32
    %c0_i32_0 = arith.constant 0 : i32
    %c0_i32_1 = arith.constant 0 : i32
    return %c0_i32, %c0_i32_0 : i32, i32
  }
  func.func @transform_4(%arg0: i32) -> (i32, i32) {
    %c0_i32 = arith.constant 0 : i32
    %c0_i32_0 = arith.constant 0 : i32
    %c0_i32_1 = arith.constant 0 : i32
    return %c0_i32, %c0_i32_0 : i32, i32
  }
  func.func @transform_5(%arg0: i32) -> (i32, i32) {
    %c0_i32 = arith.constant 0 : i32
    %c0_i32_0 = arith.constant 0 : i32
    return %arg0, %c0_i32 : i32, i32
  }
}

</mosaic_0001>

<bundles_post_ra>
// kernel: tile.13
= control target key start
LH: loop header
LB: loop body
LE: loop exit
PB: predicated region body
PF: predicated region fallthrough
CT: control target
= control target key end

     0   :  { %s22_s0 = inlined_call_operand.vmem [shape: f32[8], index: 0, kind: input, shape index: {}]   ;;  %s23_s1 = inlined_call_operand.vmem [shape: f32[8,8], index: 1, kind: output, shape index: {}]  }
   0x1   :  { %v4_v0 = vld [vmem:[%s22_s0] ss:$0 sm:$0xff] }
   0x2   :  { %5 = vst [vmem:[%s23_s1] sm:$0xff] %v4_v0 }

// kernel: tile.14
= control target key start
LH: loop header
LB: loop body
LE: loop exit
PB: predicated region body
PF: predicated region fallthrough
CT: control target
= control target key end

     0   :  { %s69_s10 = smov 56   ;;  %s70_s11 = smov 40   ;;  %vm3_vm0 = vcmask 64512   ;;  %vm9_vm1 = vcmask 523712   ;;  %vm15_vm2 = vcmask 458112   ;;  %vm21_vm3 = vcmask 392512   ;;  %s113_s0 = inlined_call_operand.vmem [shape: f32[8,8], index: 0, kind: input, shape index: {}]   ;;  %s114_s1 = inlined_call_operand.vmem [shape: f32[1,64], index: 1, kind: output, shape index: {}]  }
   0x1   :  { %v55_v0 = vld [vmem:[%s113_s0 + $0x7] sm:$0x1]   ;;  %v57_v1 = vld [vmem:[%s113_s0 + $0x5] sm:$0x1]   ;;  %v56_v2 = vld [vmem:[%s113_s0 + $0x6] sm:$0x1]  }
   0x2   :  { %7 = vrot.lane.b32.xlu0 %v55_v0, %s69_s10  ;;  %19 = vrot.lane.b32.xlu1 %v57_v1, %s70_s11  ;;  %v58_v3 = vld [vmem:[%s113_s0 + $0x4] sm:$0x1]   ;;  %v2_v4 = vld [vmem:[%s113_s0] sm:$0x1]   ;;  %s71_s18 = smov 48   ;;  %s72_s19 = smov 32  }
   0x3   :  { %4 = vst.msk [vmem:[#allocation0] sm:$0x1] %vm3_vm0, %v2_v4   ;;  %v59_v5 = vld [vmem:[%s113_s0 + $0x3] sm:$0x1]   ;;  %v60_v6 = vld [vmem:[%s113_s0 + $0x2] sm:$0x1]  }
   0x4   :  { %s73_s24 = smov 24   ;;  %s74_s25 = smov 16   ;;  %v61_v7 = vld [vmem:[%s113_s0 + $0x1] sm:$0x1]   ;;  %vm27_vm4 = vcmask 326912   ;;  %vm33_vm5 = vcmask 261312  }
   0x5   :  { %s75_s0 = smov 8   ;;  %vm39_vm6 = vcmask 195712   ;;  %vm45_vm7 = vcmask 130112  }
   0x6   :  { %13 = vrot.lane.b32.xlu0 %v56_v2, %s71_s18  ;;  %25 = vrot.lane.b32.xlu1 %v58_v3, %s72_s19 }
   0xa   :  { %31 = vrot.lane.b32.xlu0 %v59_v5, %s73_s24  ;;  %37 = vrot.lane.b32.xlu1 %v60_v6, %s74_s25 }
   0xe   :  { %43 = vrot.lane.b32.xlu0 %v61_v7, %s75_s0 }
  0x74   :  { %v8_v8 = vpop.permute.xlu0 %7   ;;  %v20_v9 = vpop.permute.xlu1 %19  }
  0x75   :  { %10 = vst.msk [vmem:[#allocation0] sm:$0x1] %vm9_vm1, %v8_v8  }
  0x78   :  { %v14_v10 = vpop.permute.xlu0 %13   ;;  %v26_v11 = vpop.permute.xlu1 %25  }
  0x79   :  { %16 = vst.msk [vmem:[#allocation0] sm:$0x1] %vm15_vm2, %v14_v10  }
  0x7a   :  { %22 = vst.msk [vmem:[#allocation0] sm:$0x1] %vm21_vm3, %v20_v9  }
  0x7b   :  { %28 = vst.msk [vmem:[#allocation0] sm:$0x1] %vm27_vm4, %v26_v11  }
  0x7c   :  { %v32_v12 = vpop.permute.xlu0 %31   ;;  %v38_v13 = vpop.permute.xlu1 %37  }
  0x7d   :  { %34 = vst.msk [vmem:[#allocation0] sm:$0x1] %vm33_vm5, %v32_v12  }
  0x7e   :  { %40 = vst.msk [vmem:[#allocation0] sm:$0x1] %vm39_vm6, %v38_v13  }
  0x80   :  { %v44_v14 = vpop.permute.xlu0 %43  }
  0x81   :  { %46 = vst.msk [vmem:[#allocation0] sm:$0x1] %vm45_vm7, %v44_v14  }
  0x88   :  { %v51_v15 = vld [vmem:[#allocation0] sm:$0x1] }
  0x89   :  { %54 = vst [vmem:[%s114_s1] sm:$0x1] %v51_v15 }

// kernel: neural_network_forward.1
= control target key start
LH: loop header
LB: loop body
LE: loop exit
PB: predicated region body
PF: predicated region fallthrough
CT: control target
= control target key end

     0   :  { %s692_s18 = smov 0   ;;  %s832_s0 = inlined_call_operand.vmem [shape: f32[48,128], index: 0, kind: input, shape index: {}]   ;;  %s833_s1 = inlined_call_operand.vmem [shape: f32[128,64], index: 1, kind: input, shape index: {}]   ;;  %s834_s2 = inlined_call_operand.vmem [shape: f32[1,64], index: 2, kind: input, shape index: {}]   ;;  %s835_s3 = inlined_call_operand.vmem [shape: f32[64,8], index: 3, kind: input, shape index: {}]   ;;  %s836_s4 = inlined_call_operand.vmem [shape: f32[1,8], index: 4, kind: input, shape index: {}]   ;;  %s837_s5 = inlined_call_operand.vmem [shape: f32[48,8], index: 5, kind: output, shape index: {}]  }
   0x1 LB: > { %s520_s19 = sadd.s32 4294967295, %s658_s18   ;;  %p524_p0 = scmp.ge.s32.totalorder %s658_s18, 1  ;;  %s658_s18 = sphi %s692_s18, %s15_s18  }
   0x2   : > { %p188_p1 = scmp.lt.s32.totalorder %s658_s18, 3 }
   0x4   : > { %p189_p2 = pnand %p524_p0, %p188_p1 }
   0x5   : > { %s216_s21 = smul.u32 (!%p189_p2), 3, %s520_s19 }
   0x6   : > { %192 = sbr.rel (%p189_p2) target bundleno = 479 (0x1df), region = 40 }
   0x7   : > { %p217_p3 = scmp.lt.s32.totalorder (!%p189_p2), %s216_s21, 5 }
   0xb   : > { %v246_v0 = vld [vmem:[%s833_s1 + $0x78] sm:$0xff]  ;;  %v660_v1 = vmov 0.0   ;;  %v245_v2 = vld [vmem:[%s833_s1 + $0x70] sm:$0xff]  ;;  %vm661_vm0 = vmmov 0   ;;  %v244_v3 = vld [vmem:[%s833_s1 + $0x68] sm:$0xff]  ;;  %s839_s21 = smov (!%p217_p3, %s216_s21), 5 }
   0xc   : > { %564 = vmatprep.subr.mxu0 %v660_v1  ;;  %596 = vmatprep.mubr.msk.f32.mxu0 %vm661_vm0, %v660_v1  ;;  %v243_v4 = vld [vmem:[%s833_s1 + $0x60] sm:$0xff]  ;;  %v344_v5 = vld [vmem:[%s835_s3 + $0x38] sm:$0xff]  ;;  %v343_v6 = vld [vmem:[%s835_s3 + $0x30] sm:$0xff]  ;;  %s525_s8 = sshll.u32 %s839_s21, 3  ;;  %vm352_vm1 = vcmask 523264   ;;  %vm460_vm2 = vcmask 64512  }
   0xd   : > { %565 = vmatpush3.msra.mxu0 %v246_v0  ;;  %605 = vmatprep.subr.mxu1 %v660_v1  ;;  %v242_v7 = vld [vmem:[%s833_s1 + $0x58] sm:$0xff]  ;;  %v342_v8 = vld [vmem:[%s835_s3 + $0x28] sm:$0xff]  ;;  %v241_v9 = vld [vmem:[%s833_s1 + $0x50] sm:$0xff]  ;;  %s220_s15 = scalar_lea.vmem %s832_s0, %s525_s8  ;;  %s226_s7 = scalar_lea.vmem %s837_s5, %s525_s8 }
   0xe   : > { %566 = vmatprep.subr.mxu0 %v660_v1  ;;  %621 = vmatprep.mubr.msk.f32.mxu1 %vm661_vm0, %v660_v1  ;;  %v341_v10 = vld [vmem:[%s835_s3 + $0x20] sm:$0xff]  ;;  %v240_v11 = vld [vmem:[%s833_s1 + $0x48] sm:$0xff]  ;;  %v340_v12 = vld [vmem:[%s835_s3 + $0x18] sm:$0xff] }
   0xf   : > { %567 = vmatpush3.msra.mxu0 %v245_v2  ;;  %606 = vmatpush3.msra.mxu1 %v344_v5  ;;  %v239_v13 = vld [vmem:[%s833_s1 + $0x40] sm:$0xff]  ;;  %v238_v14 = vld [vmem:[%s833_s1 + $0x38] sm:$0xff]  ;;  %v237_v15 = vld [vmem:[%s833_s1 + $0x30] sm:$0xff] }
  0x10   : > { %568 = vmatprep.subr.mxu0 %v660_v1  ;;  %607 = vmatprep.subr.mxu1 %v660_v1  ;;  %v236_v16 = vld [vmem:[%s833_s1 + $0x28] sm:$0xff]  ;;  %v235_v17 = vld [vmem:[%s833_s1 + $0x20] sm:$0xff]  ;;  %v234_v18 = vld [vmem:[%s833_s1 + $0x18] sm:$0xff] }
  0x11   : > { %569 = vmatpush3.msra.mxu0 %v244_v3  ;;  %608 = vmatpush3.msra.mxu1 %v343_v6  ;;  %v233_v19 = vld [vmem:[%s833_s1 + $0x10] sm:$0xff]  ;;  %v232_v20 = vld [vmem:[%s833_s1 + $0x8] sm:$0xff]  ;;  %v231_v21 = vld [vmem:[%s833_s1] sm:$0xff] }
  0x12   : > { %570 = vmatprep.subr.mxu0 %v660_v1  ;;  %609 = vmatprep.subr.mxu1 %v660_v1  ;;  %v228_v22 = vld [vmem:[%s220_s15] sm:$0xff]  ;;  %v229_v23 = vld [vmem:[%s220_s15 + $0x8] sm:$0xff]  ;;  %v230_v24 = vld [vmem:[%s220_s15 + $0x10] sm:$0xff] }
  0x13   : > { %571 = vmatpush3.msra.mxu0 %v243_v4  ;;  %610 = vmatpush3.msra.mxu1 %v342_v8  ;;  %v339_v25 = vld [vmem:[%s835_s3 + $0x10] sm:$0xff]  ;;  %v338_v26 = vld [vmem:[%s835_s3 + $0x8] sm:$0xff]  ;;  %v337_v27 = vld [vmem:[%s835_s3] sm:$0xff] }
  0x14   : > { %572 = vmatprep.subr.mxu0 %v660_v1  ;;  %611 = vmatprep.subr.mxu1 %v660_v1  ;;  %v527_v28 = vld [vmem:[%s834_s2] ss:$0 sm:$0xff] }
  0x15   : > { %573 = vmatpush3.msra.mxu0 %v242_v7  ;;  %612 = vmatpush3.msra.mxu1 %v341_v10  ;;  %v528_v41 = vld [vmem:[%s836_s4] ss:$0 sm:$0xff] }
  0x16   : > { %574 = vmatprep.subr.mxu0 %v660_v1  ;;  %613 = vmatprep.subr.mxu1 %v660_v1 }
  0x17   : > { %575 = vmatpush3.msra.mxu0 %v241_v9  ;;  %614 = vmatpush3.msra.mxu1 %v340_v12 }
  0x18   : > { %576 = vmatprep.subr.mxu0 %v660_v1  ;;  %615 = vmatprep.subr.mxu1 %v660_v1 }
  0x19   : > { %577 = vmatpush3.msra.mxu0 %v240_v11  ;;  %616 = vmatpush3.msra.mxu1 %v339_v25 }
  0x1a   : > { %578 = vmatprep.subr.mxu0 %v660_v1  ;;  %617 = vmatprep.subr.mxu1 %v660_v1 }
  0x1b   : > { %579 = vmatpush3.msra.mxu0 %v239_v13  ;;  %618 = vmatpush3.msra.mxu1 %v338_v26 }
  0x1c   : > { %580 = vmatprep.subr.mxu0 %v660_v1  ;;  %619 = vmatprep.subr.mxu1 %v660_v1 }
  0x1d   : > { %581 = vmatpush3.msra.mxu0 %v238_v14  ;;  %620 = vmatpush3.msra.mxu1 %v337_v27 }
  0x1e   : > { %582 = vmatprep.subr.mxu0 %v660_v1 }
  0x1f   : > { %583 = vmatpush3.msra.mxu0 %v237_v15 }
  0x20   : > { %584 = vmatprep.subr.mxu0 %v660_v1 }
  0x21   : > { %585 = vmatpush3.msra.mxu0 %v236_v16 }
  0x22   : > { %586 = vmatprep.subr.mxu0 %v660_v1 }
  0x23   : > { %587 = vmatpush3.msra.mxu0 %v235_v17 }
  0x24   : > { %588 = vmatprep.subr.mxu0 %v660_v1 }
  0x25   : > { %589 = vmatpush3.msra.mxu0 %v234_v18 }
  0x26   : > { %590 = vmatprep.subr.mxu0 %v660_v1 }
  0x27   : > { %591 = vmatpush3.msra.mxu0 %v233_v19 }
  0x28   : > { %592 = vmatprep.subr.mxu0 %v660_v1 }
  0x29   : > { %593 = vmatpush3.msra.mxu0 %v232_v20 }
  0x2a   : > { %594 = vmatprep.subr.mxu0 %v660_v1 }
  0x2b   : > { %595 = vmatpush3.msra.mxu0 %v231_v21 }
  0x2c   : > { %597 = vmatmul.mubr.f32.vlgmr.msra.gmra.mxu0 %v228_v22 }
  0x2d   : > { %599 = vmatprep.mubr.msk.f32.mxu0 %vm661_vm0, %v660_v1 }
  0x30   : > { %600 = vmatmul.mubr.f32.gmra.mxu0 %v229_v23 }
  0x31   : > { %602 = vmatprep.mubr.msk.f32.mxu0 %vm661_vm0, %v660_v1 }
  0x34   : > { %603 = vmatmul.mubr.f32.gmra.mxu0 %v230_v24 }
  0xec   : > { %v320_v29 = vpop.f32.mrf.mxu0 }
  0xed   : > { %v321_v30 = vadd.f32 %v527_v28, %v320_v29 }
  0xee   : > { %v598_v31 = vpop.f32.mrf.mxu0 }
  0xef   : > { %v334_v32 = vmax.f32 %v321_v30, 0.0 }
  0xf0   : > { %v325_v33 = vpop.f32.mrf.mxu0 }
  0xf1   : > { %v326_v34 = vadd.f32 %v527_v28, %v325_v33  ;;  %622 = vmatmul.mubr.msk.f32.vlgmr.msra.gmra.mxu1 %vm352_vm1, %v334_v32 }
  0xf2   : > { %v601_v35 = vpop.f32.mrf.mxu0  ;;  %624 = vmatprep.mubr.msk.f32.mxu1 %vm661_vm0, %v660_v1 }
  0xf3   : > { %v335_v36 = vmax.f32 %v326_v34, 0.0 }
  0xf4   : > { %v330_v37 = vpop.f32.mrf.mxu0 }
  0xf5   : > { %v331_v38 = vadd.f32 %v527_v28, %v330_v37  ;;  %625 = vmatmul.mubr.msk.f32.gmra.mxu1 %vm352_vm1, %v335_v36 }
  0xf6   : > { %v604_v39 = vpop.f32.mrf.mxu0  ;;  %627 = vmatprep.mubr.msk.f32.mxu1 %vm661_vm0, %v660_v1 }
  0xf7   : > { %v336_v40 = vmax.f32 %v331_v38, 0.0 }
  0xf9   : > { %628 = vmatmul.mubr.msk.f32.gmra.mxu1 %vm352_vm1, %v336_v40 }
 0x1b1   : > { %v428_v42 = vpop.f32.mrf.mxu1 }
 0x1b2   : > { %v429_v43 = vadd.f32 %v528_v41, %v428_v42 }
 0x1b3   : > { %v623_v44 = vpop.f32.mrf.mxu1 }
 0x1b4   : > { %v442_v45 = vsub.f32 0.0, %v429_v43 }
 0x1b5   : > { %v433_v46 = vpop.f32.mrf.mxu1 }
 0x1b6   : > { %v445_v47 = vmul.f32 1.442695, %v442_v45  ;;  %v434_v48 = vadd.f32 %v528_v41, %v433_v46 }
 0x1b7   : > { %v626_v49 = vpop.f32.mrf.mxu1 }
 0x1b8   : > { %640 = vpow2.f32 %v445_v47  ;;  %v443_v50 = vsub.f32 0.0, %v434_v48 }
 0x1b9   : > { %v438_v51 = vpop.f32.mrf.mxu1 }
 0x1ba   : > { %v447_v52 = vmul.f32 1.442695, %v443_v50  ;;  %v439_v53 = vadd.f32 %v528_v41, %v438_v51 }
 0x1bb   : > { %v629_v54 = vpop.f32.mrf.mxu1 }
 0x1bc   : > { %642 = vpow2.f32 %v447_v52  ;;  %v444_v55 = vsub.f32 0.0, %v439_v53 }
 0x1be   : > { %v449_v56 = vmul.f32 1.442695, %v444_v55 }
 0x1c0   : > { %644 = vpow2.f32 %v449_v56 }
 0x1c5   : > { %v641_v57 = vpop.eup %640 }
 0x1c6   : > { %v451_v58 = vadd.f32 1.0, %v641_v57 }
 0x1c8   : > { %646 = vrcp.f32 %v451_v58 }
 0x1c9   : > { %v643_v59 = vpop.eup %642 }
 0x1ca   : > { %v452_v60 = vadd.f32 1.0, %v643_v59 }
 0x1cc   : > { %648 = vrcp.f32 %v452_v60 }
 0x1cd   : > { %v645_v61 = vpop.eup %644 }
 0x1ce   : > { %v453_v62 = vadd.f32 1.0, %v645_v61 }
 0x1d0   : > { %650 = vrcp.f32 %v453_v62 }
 0x1d5   : > { %v647_v63 = vpop.eup %646 }
 0x1d6   : > { %461 = vst.msk [vmem:[%s226_s7] sm:$0xff] %vm460_vm2, %v647_v63 }
 0x1d9   : > { %v649_v0 = vpop.eup %648 }
 0x1da   : > { %462 = vst.msk [vmem:[%s226_s7 + $0x8] sm:$0xff] %vm460_vm2, %v649_v0 }
 0x1dd   : > { %v651_v1 = vpop.eup %650 }
 0x1de   : > { %463 = vst.msk [vmem:[%s226_s7 + $0x10] sm:$0xff] %vm460_vm2, %v651_v1 }
 0x1df PF: > { %s15_s18 = sadd.s32 1, %s658_s18  }
 0x1e0   : > { %p12_p4 = scmp.ge.s32.totalorder %s15_s18, 4  }
 0x1e2   :  { %14 = sbr.rel (!%p12_p4) target bundleno = 1 (0x1), region = 70 }

</bundles_post_ra>
